<compile_context>
chip_gen: v7x
topology: tpu7x:2x2x1
jax: 0.10.0
libtpu: 0.0.40
codegen_flags: <defaults>
</compile_context>

<pallas_src>
import jax
import jax.numpy as jnp
from jax.experimental import pallas as pl
from jax.experimental.pallas import tpu as pltpu


def _matmul_kernel(wf_ref, xs_ref, out_ref):
    # wf_ref:  (M, K)   fused weight  (M = A*C_out, K = C_in+1)
    # xs_ref:  (K, HW)  padded+flattened input with constant-1 bias row
    # out_ref: (M, HW)  fused output slab
    out_ref[...] = jnp.dot(wf_ref[...], xs_ref[...],
                           preferred_element_type=jnp.float32)


def make_model_forward(conv_w, conv_b, alpha):
    """Build a jitted forward for fixed weights.

    conv_w: (C_out, C_in, 1, 1); conv_b: (C_out,); alpha: (A, C_out, 1, 1).
    Returned fn maps x: (1, C_in, H, W) -> (A, C_out, H+2, W+2) f32.
    """
    c_out, c_in = conv_w.shape[0], conv_w.shape[1]
    a_dim = alpha.shape[0]
    m = a_dim * c_out

    # ---- weight fusion: done ONCE here, baked into the jitted closure ----
    w_mat = conv_w.reshape(c_out, c_in).astype(jnp.float32)          # (C_out, C_in)
    a_mat = alpha.reshape(a_dim, c_out).astype(jnp.float32)          # (A, C_out)
    b_vec = conv_b.astype(jnp.float32)                               # (C_out,)
    wf = (a_mat[:, :, None] * w_mat[None, :, :]).reshape(m, c_in)    # (M, C_in)
    bf = (a_mat * b_vec[None, :]).reshape(m, 1)                      # (M, 1)
    wfull = jnp.concatenate([wf, bf], axis=1)                        # (M, C_in+1)
    wfull = jax.device_put(wfull)

    @jax.jit
    def forward(x):
        n, cin, h, w = x.shape
        assert n == 1 and cin == c_in, (
            "reference module broadcasts against alpha with batch 1")
        ho, wo = h + 2, w + 2
        hw = ho * wo

        # Build padded/flattened slab (with ones row for the bias) in the wrapper.
        x3 = x[0].astype(jnp.float32)                                # (C_in, H, W)
        x_pad = jnp.pad(x3, ((0, 0), (1, 1), (1, 1)))                # (C_in, Ho, Wo)
        xs = x_pad.reshape(c_in, hw)
        xs = jnp.concatenate([xs, jnp.ones((1, hw), jnp.float32)], axis=0)  # (K, HW)

        out = pl.pallas_call(
            _matmul_kernel,
            out_shape=jax.ShapeDtypeStruct((m, hw), jnp.float32),
            in_specs=[
                pl.BlockSpec((m, c_in + 1), lambda: (0, 0)),
                pl.BlockSpec((c_in + 1, hw), lambda: (0, 0)),
            ],
            out_specs=pl.BlockSpec((m, hw), lambda: (0, 0)),
        )(wfull, xs)

        # Metadata-only reshape of the contiguous (M, HW) slab.
        return out.reshape(a_dim, c_out, ho, wo)

    return forward


def _reference(x, conv_w, conv_b, alpha):
    c_out, c_in = conv_w.shape[0], conv_w.shape[1]
    x_pad = jnp.pad(x[0], ((0, 0), (1, 1), (1, 1)))                      # (C_in, Ho, Wo)
    t1 = jnp.einsum('oc,chw->ohw', conv_w.reshape(c_out, c_in), x_pad)   # (C_out, Ho, Wo)
    t1 = t1 + conv_b[:, None, None]
    t1 = t1[None]                                                        # (1, C_out, Ho, Wo)
    return t1 * alpha                                                    # (A, C_out, Ho, Wo)


if __name__ == "__main__":
    key = jax.random.PRNGKey(0)
    k1, k2, k3, k4 = jax.random.split(key, 4)

    # Small shapes consistent with the module: N=1, C_in=3, H=W=16; conv -> 8 ch;
    # alpha (8, 8, 1, 1).
    x = jax.random.normal(k1, (1, 3, 16, 16), dtype=jnp.float32)
    conv_w = jax.random.normal(k2, (8, 3, 1, 1), dtype=jnp.float32) * 0.1
    conv_b = jax.random.normal(k3, (8,), dtype=jnp.float32) * 0.1
    alpha = jax.random.normal(k4, (8, 8, 1, 1), dtype=jnp.float32)

    model_forward = make_model_forward(conv_w, conv_b, alpha)
    out = model_forward(x)
    jax.block_until_ready(out)

    ref = _reference(x, conv_w, conv_b, alpha)
    assert out.shape == (8, 8, 18, 18), out.shape
    assert jnp.allclose(out, ref, atol=1e-5, rtol=1e-5), "mismatch vs reference"
    print("KERNEL_OK")
</pallas_src>

<mosaic_0001>
module attributes {stable_mosaic.version = 11 : i64} {
  func.func @_matmul_kernel(%arg0: memref<64x4xf32, #tpu.memory_space<vmem>>, %arg1: memref<4x324xf32, #tpu.memory_space<vmem>>, %arg2: memref<64x324xf32, #tpu.memory_space<vmem>>) attributes {dimension_semantics = [], scalar_prefetch = 0 : i64, scratch_operands = 0 : i64, tpu.core_type = #tpu.core_type<tc>} {
    %c0 = arith.constant 0 : index
    %c0_0 = arith.constant 0 : index
    %0 = vector.load %arg0[%c0, %c0_0] : memref<64x4xf32, #tpu.memory_space<vmem>>, vector<64x4xf32>
    %c0_1 = arith.constant 0 : index
    %c0_2 = arith.constant 0 : index
    %1 = vector.load %arg1[%c0_1, %c0_2] : memref<4x324xf32, #tpu.memory_space<vmem>>, vector<4x324xf32>
    %cst = arith.constant dense<0.000000e+00> : vector<64x324xf32>
    %2 = tpu.matmul %0, %1, %cst {dimension_numbers = #tpu.dot_dimension_numbers<[1], [0], [0], [1], [0, 0, 1, 1], [], []>} : vector<64x4xf32>, vector<4x324xf32>, vector<64x324xf32> -> vector<64x324xf32>
    %c0_3 = arith.constant 0 : index
    %c0_4 = arith.constant 0 : index
    %3 = vector.load %arg2[%c0_3, %c0_4] : memref<64x324xf32, #tpu.memory_space<vmem>>, vector<64x324xf32>
    tpu.vector_store %arg2[%c0_3, %c0_4], %2 {strides = array<i32>} : memref<64x324xf32, #tpu.memory_space<vmem>>, vector<64x324xf32>,
    return
  }
}

</mosaic_0001>

<bundles_post_ra>
// kernel: forward.1
= control target key start
LH: loop header
LB: loop body
LE: loop exit
PB: predicated region body
PF: predicated region fallthrough
CT: control target
= control target key end

     0   :  { %vm49_vm0 = vcmask 1043456   ;;  %v349_v1 = vmov 0.0   ;;  %vm24_vm1 = vcmask 31744   ;;  %vm276_vm2 = vcmask 556032   ;;  %s497_s1 = inlined_call_operand.vmem [shape: f32[4,324], index: 1, kind: input, shape index: {}]   ;;  %s498_s0 = inlined_call_operand.vmem [shape: f32[64,4], index: 0, kind: input, shape index: {}]   ;;  %s499_s2 = inlined_call_operand.vmem [shape: f32[64,324], index: 2, kind: output, shape index: {}]  }
   0x1   :  { %v19_v0 = vld [vmem:[%s497_s1] sm:$0xff]  ;;  %120 = vmatprep.mubr.f32.mxu0 %v349_v1  ;;  %156 = vmatprep.mubr.f32.mxu1 %v349_v1  ;;  %v17_v4 = vld [vmem:[%s498_s0 + $0x30] sm:$0xff]  ;;  %v20_v5 = vld [vmem:[%s497_s1 + $0x8] sm:$0xf] }
   0x2   :  { %v23_v2 = vcombine.high %v19_v0, %v19_v0  ;;  %v11_v3 = vld [vmem:[%s498_s0] sm:$0xff]  ;;  %v12_v6 = vld [vmem:[%s498_s0 + $0x8] sm:$0xff]  ;;  %v18_v7 = vld [vmem:[%s498_s0 + $0x38] sm:$0xff] }
   0x3   :  { %v13_v8 = vld [vmem:[%s498_s0 + $0x10] sm:$0xff]  ;;  %v14_v9 = vld [vmem:[%s498_s0 + $0x18] sm:$0xff]  ;;  %v15_v10 = vld [vmem:[%s498_s0 + $0x20] sm:$0xff] }
   0x4   :  { %303 = vmatprep.subr.msk.mxu0 %vm49_vm0, %v23_v2  ;;  %345 = vmatprep.subr.msk.mxu1 %vm49_vm0, %v23_v2  ;;  %v16_v11 = vld [vmem:[%s498_s0 + $0x28] sm:$0xff] }
   0x5   :  { %304 = vmatpush1.msk.msra.mxu0 %vm49_vm0, %v19_v0  ;;  %346 = vmatpush1.msk.msra.mxu1 %vm49_vm0, %v19_v0 }
   0x6   :  { %305 = vmatmul.mubr.msk.f32.vlgmr.msra.gmra.mrb[0].mxu0 %vm24_vm1, %v11_v3  ;;  %311 = vmatmul.mubr.msk.f32.vlgmr.msra.gmra.mrb[0].mxu1 %vm24_vm1, %v17_v4 }
   0x7   :  { %331 = vmatprep.subr.msk.mxu1 %vm49_vm0, %v20_v5  ;;  %126 = vmatprep.mubr.f32.mxu0 %v349_v1 }
   0x8   :  { %332 = vmatpush3.msk.msra.mxu1 %vm49_vm0, %v20_v5  ;;  %162 = vmatprep.mubr.f32.mxu1 %v349_v1 }
   0xa   :  { %306 = vmatmul.mubr.msk.f32.gmra.mrb[2].mxu0 %vm24_vm1, %v12_v6  ;;  %312 = vmatmul.mubr.msk.f32.gmra.mrb[2].mxu1 %vm24_vm1, %v18_v7 }
   0xb   :  { %132 = vmatprep.mubr.f32.mxu0 %v349_v1  ;;  %333 = vmatprep.mubr.msk.f32.mxu1 %vm24_vm1, %v11_v3 }
   0xe   :  { %307 = vmatmul.mubr.msk.f32.gmra.mrb[4].mxu0 %vm24_vm1, %v13_v8  ;;  %334 = vmatmul.mubr.msk.f32.vlgmr.msra.gmra.mrb[4].mxu1 %vm24_vm1, %v12_v6 }
   0xf   :  { %138 = vmatprep.mubr.f32.mxu0 %v349_v1  ;;  %336 = vmatprep.mubr.msk.f32.mxu1 %vm24_vm1, %v13_v8 }
  0x12   :  { %308 = vmatmul.mubr.msk.f32.gmra.mrb[6].mxu0 %vm24_vm1, %v14_v9  ;;  %337 = vmatmul.mubr.msk.f32.gmra.mrb[6].mxu1 %vm24_vm1, %v14_v9 }
  0x13   :  { %144 = vmatprep.mubr.f32.mxu0 %v349_v1  ;;  %339 = vmatprep.mubr.msk.f32.mxu1 %vm24_vm1, %v15_v10 }
  0x16   :  { %309 = vmatmul.mubr.msk.f32.gmra.mrb[8].mxu0 %vm24_vm1, %v15_v10  ;;  %340 = vmatmul.mubr.msk.f32.gmra.mrb[8].mxu1 %vm24_vm1, %v16_v11 }
  0x17   :  { %150 = vmatprep.mubr.f32.mxu0 %v349_v1  ;;  %342 = vmatprep.mubr.msk.f32.mxu1 %vm24_vm1, %v17_v4 }
  0x1a   :  { %310 = vmatmul.mubr.msk.f32.gmra.mrb[10].mxu0 %vm24_vm1, %v16_v11  ;;  %343 = vmatmul.mubr.msk.f32.gmra.mrb[10].mxu1 %vm24_vm1, %v18_v7 }
  0xd9   :  { %v122_v12 = vpop.f32.mrb[0].mxu0  ;;  %v158_v13 = vpop.f32.mrb[0].mxu1 }
  0xda   :  { %274 = vst [vmem:[%s499_s2] sm:$0xff] %v122_v12  ;;  %293 = vst [vmem:[%s499_s2 + $0x90] sm:$0xff] %v158_v13  ;;  %v124_v14 = vpop.f32.mrb[1].mxu0  ;;  %v160_v15 = vpop.f32.mrb[1].mxu1 }
  0xdb   :  { %275 = vst [vmem:[%s499_s2 + $0x8] sm:$0xff] %v124_v14  ;;  %294 = vst [vmem:[%s499_s2 + $0x98] sm:$0xff] %v160_v15 }
  0xdd   :  { %v128_v16 = vpop.f32.mrb[2].mxu0  ;;  %v164_v17 = vpop.f32.mrb[2].mxu1 }
  0xde   :  { %278 = vst [vmem:[%s499_s2 + $0x18] sm:$0xff] %v128_v16  ;;  %296 = vst [vmem:[%s499_s2 + $0xa8] sm:$0xff] %v164_v17  ;;  %v130_v18 = vpop.f32.mrb[3].mxu0  ;;  %v166_v19 = vpop.f32.mrb[3].mxu1 }
  0xdf   :  { %279 = vst [vmem:[%s499_s2 + $0x20] sm:$0xff] %v130_v18  ;;  %297 = vst [vmem:[%s499_s2 + $0xb0] sm:$0xff] %v166_v19 }
  0xe1   :  { %v134_v20 = vpop.f32.mrb[4].mxu0  ;;  %v335_v21 = vpop.f32.mrb[4].mxu1 }
  0xe2   :  { %281 = vst [vmem:[%s499_s2 + $0x30] sm:$0xff] %v134_v20  ;;  %280 = vst.msk [vmem:[%s499_s2 + $0x28] sm:$0xff] %vm276_vm2, %v335_v21  ;;  %v136_v22 = vpop.f32.mrb[5].mxu0  ;;  %v235_v23 = vpop.f32.mrb[5].mxu1 }
  0xe3   :  { %282 = vst [vmem:[%s499_s2 + $0x38] sm:$0xff] %v136_v22  ;;  %277 = vst.msk [vmem:[%s499_s2 + $0x10] sm:$0xff] %vm276_vm2, %v235_v23 }
  0xe5   :  { %v140_v24 = vpop.f32.mrb[6].mxu0  ;;  %v338_v25 = vpop.f32.mrb[6].mxu1 }
  0xe6   :  { %284 = vst [vmem:[%s499_s2 + $0x48] sm:$0xff] %v140_v24  ;;  %286 = vst.msk [vmem:[%s499_s2 + $0x58] sm:$0xff] %vm276_vm2, %v338_v25  ;;  %v142_v26 = vpop.f32.mrb[7].mxu0  ;;  %v245_v27 = vpop.f32.mrb[7].mxu1 }
  0xe7   :  { %285 = vst [vmem:[%s499_s2 + $0x50] sm:$0xff] %v142_v26  ;;  %283 = vst.msk [vmem:[%s499_s2 + $0x40] sm:$0xff] %vm276_vm2, %v245_v27 }
  0xe9   :  { %v146_v28 = vpop.f32.mrb[8].mxu0  ;;  %v341_v29 = vpop.f32.mrb[8].mxu1 }
  0xea   :  { %287 = vst [vmem:[%s499_s2 + $0x60] sm:$0xff] %v146_v28  ;;  %292 = vst.msk [vmem:[%s499_s2 + $0x88] sm:$0xff] %vm276_vm2, %v341_v29  ;;  %v148_v30 = vpop.f32.mrb[9].mxu0  ;;  %v255_v31 = vpop.f32.mrb[9].mxu1 }
  0xeb   :  { %288 = vst [vmem:[%s499_s2 + $0x68] sm:$0xff] %v148_v30  ;;  %289 = vst.msk [vmem:[%s499_s2 + $0x70] sm:$0xff] %vm276_vm2, %v255_v31 }
  0xed   :  { %v152_v32 = vpop.f32.mrb[10].mxu0  ;;  %v344_v33 = vpop.f32.mrb[10].mxu1 }
  0xee   :  { %290 = vst [vmem:[%s499_s2 + $0x78] sm:$0xff] %v152_v32  ;;  %298 = vst.msk [vmem:[%s499_s2 + $0xb8] sm:$0xff] %vm276_vm2, %v344_v33  ;;  %v154_v34 = vpop.f32.mrb[11].mxu0  ;;  %v265_v35 = vpop.f32.mrb[11].mxu1 }
  0xef   :  { %291 = vst [vmem:[%s499_s2 + $0x80] sm:$0xff] %v154_v34  ;;  %295 = vst.msk [vmem:[%s499_s2 + $0xa0] sm:$0xff] %vm276_vm2, %v265_v35 }

</bundles_post_ra>
